<compile_context>
chip_gen: v6e
topology: v6e:2x2x1
jax: 0.10.0
libtpu: 0.0.40
codegen_flags: <defaults>
</compile_context>

<pallas_src>
import math
import functools

import jax
import jax.numpy as jnp
from jax.experimental import pallas as pl
from jax.experimental.pallas import tpu as pltpu


def _round_up(n, m):
    return ((n + m - 1) // m) * m


def _sphere_linear_kernel(x_ref, xinv_ref, w_ref, winv_ref, o_ref):
    # Raw (un-normalized) tiles go straight to the MXU in their native dtype;
    # accumulation is f32.
    out = jax.lax.dot_general(
        x_ref[...], w_ref[...],                       # (TB, E) . (TC, E)^T
        dimension_numbers=(((1,), (1,)), ((), ())),
        preferred_element_type=jnp.float32)           # (TB, TC) f32

    # Rank-1 post-matmul normalization: out[b, c] *= 1/||x_b|| * 1/||w_c||.
    out = out * xinv_ref[...] * winv_ref[...]         # (TB,1) and (1,TC) bcast
    o_ref[...] = out.astype(o_ref.dtype)


def _vmem_estimate(tb, tc, E, in_itemsize, out_itemsize):
    # Double-buffered inputs/outputs + the f32 dot result living in vregs/VMEM.
    per_buf = (tb * E + tc * E) * in_itemsize + (tb + tc) * 4 + tb * tc * out_itemsize
    return 2 * per_buf + tb * tc * 4


@functools.partial(jax.jit, static_argnames=("block_b", "block_c", "eps"))
def sphere_linear(x, weight, *, block_b=256, block_c=512, eps=1e-12):
    """x: (B, E), weight: (C, E). Returns (B, C) cosine similarities."""
    B, E = x.shape
    C, E2 = weight.shape
    assert E == E2, (E, E2)

    in_itemsize = jnp.dtype(x.dtype).itemsize
    out_dtype = x.dtype
    out_itemsize = jnp.dtype(out_dtype).itemsize

    # Sublane multiple depends on dtype packing (8 x f32 / 16 x bf16 / 32 x i8).
    sub = max(8, 32 // in_itemsize)
    tb = min(block_b, _round_up(B, sub))
    tc = min(block_c, _round_up(C, 128))

    # Keep (double-buffered) tiles inside a conservative VMEM budget.
    VMEM_BUDGET = 24 * 1024 * 1024
    while _vmem_estimate(tb, tc, E, in_itemsize, out_itemsize) > VMEM_BUDGET and tc > 128:
        tc = max(128, _round_up(tc // 2, 128))
    while _vmem_estimate(tb, tc, E, in_itemsize, out_itemsize) > VMEM_BUDGET and tb > sub:
        tb = max(sub, _round_up(tb // 2, sub))

    Bp = _round_up(B, tb)
    Cp = _round_up(C, tc)

    # Reciprocal row norms, computed ONCE (F.normalize: v / max(||v||, eps)).
    # NOTE: for a training loop, the weight pad + w_inv can be hoisted out of
    # the per-step hot path entirely (weights change once per step).
    x_f32 = x.astype(jnp.float32)
    w_f32 = weight.astype(jnp.float32)
    x_inv = jax.lax.rsqrt(
        jnp.maximum(jnp.sum(x_f32 * x_f32, axis=1, keepdims=True), eps * eps))  # (B, 1)
    w_inv = jax.lax.rsqrt(
        jnp.maximum(jnp.sum(w_f32 * w_f32, axis=1, keepdims=True), eps * eps))  # (C, 1)
    w_inv = w_inv.reshape(1, C)                                                  # lane-dense

    # Pad to tile multiples; padded inv-norms are 0 so padded outputs are 0.
    x_p = x if Bp == B else jnp.pad(x, ((0, Bp - B), (0, 0)))
    w_p = weight if Cp == C else jnp.pad(weight, ((0, Cp - C), (0, 0)))
    x_inv_p = x_inv if Bp == B else jnp.pad(x_inv, ((0, Bp - B), (0, 0)))
    w_inv_p = w_inv if Cp == C else jnp.pad(w_inv, ((0, 0), (0, Cp - C)))

    nj, ni = Cp // tc, Bp // tb
    # Grid order (C-tiles, B-tiles): W tile resident across the inner axis,
    # x streamed; megacore sharding falls on the C axis.
    grid = (nj, ni)

    out = pl.pallas_call(
        _sphere_linear_kernel,
        out_shape=jax.ShapeDtypeStruct((Bp, Cp), out_dtype),
        grid_spec=pltpu.PrefetchScalarGridSpec(
            num_scalar_prefetch=0,
            grid=grid,
            in_specs=[
                pl.BlockSpec((tb, E), lambda j, i: (i, 0)),   # x        (streamed)
                pl.BlockSpec((tb, 1), lambda j, i: (i, 0)),   # 1/||x||  (streamed)
                pl.BlockSpec((tc, E), lambda j, i: (j, 0)),   # W        (resident per j)
                pl.BlockSpec((1, tc), lambda j, i: (0, j)),   # 1/||w||  (resident per j)
            ],
            out_specs=pl.BlockSpec((tb, tc), lambda j, i: (i, j)),
        ),
        compiler_params=pltpu.CompilerParams(
            dimension_semantics=("parallel", "parallel"),
            vmem_limit_bytes=32 * 1024 * 1024,
        ),
        cost_estimate=pl.CostEstimate(
            flops=int(2 * Bp * Cp * E + 2 * Bp * Cp),
            transcendentals=0,
            bytes_accessed=int(
                (Bp * E * nj + Cp * E) * in_itemsize       # x re-streamed, W once
                + (Bp * nj + Cp) * 4                       # reciprocal norms
                + Bp * Cp * out_itemsize),                 # output
        ),
    )(x_p, x_inv_p, w_p, w_inv_p)

    return out[:B, :C]


def _reference(x, weight, eps=1e-12):
    """Pure-JAX mirror of SphereLinearLayer.forward (F.normalize + F.linear)."""
    xn = x / jnp.maximum(jnp.linalg.norm(x, axis=1, keepdims=True), eps)
    wn = weight / jnp.maximum(jnp.linalg.norm(weight, axis=1, keepdims=True), eps)
    return xn @ wn.T


if __name__ == "__main__":
    # Small shapes consistent with the module: batch=10 embeddings of size 32,
    # 200 classes (exercises both batch and class padding / slicing paths).
    B, E, C = 10, 32, 200
    key = jax.random.PRNGKey(0)
    kx, kw = jax.random.split(key)

    x = jax.random.normal(kx, (B, E), dtype=jnp.float32)
    # xavier_uniform_-style weight init, as in the PyTorch module.
    limit = math.sqrt(6.0 / (C + E))
    weight = jax.random.uniform(kw, (C, E), dtype=jnp.float32,
                                minval=-limit, maxval=limit)

    out = sphere_linear(x, weight)
    out = jax.block_until_ready(out)

    ref = _reference(x, weight)
    assert out.shape == (B, C), out.shape
    # NOTE: f32 inputs at default MXU precision passed 1e-5 on hardware for the
    # previous version; bf16 inputs would need a looser tolerance (~2e-2).
    assert jnp.allclose(out, ref, rtol=1e-5, atol=1e-5), (
        float(jnp.max(jnp.abs(out - ref))))

    print("KERNEL_OK")
</pallas_src>

<mosaic_0001>
module attributes {stable_mosaic.version = 11 : i64} {
  func.func @_sphere_linear_kernel(%arg0: i32, %arg1: i32, %arg2: memref<16x32xf32, #tpu.memory_space<vmem>>, %arg3: memref<16x1xf32, #tpu.memory_space<vmem>>, %arg4: memref<256x32xf32, #tpu.memory_space<vmem>>, %arg5: memref<1x256xf32, #tpu.memory_space<vmem>>, %arg6: memref<16x256xf32, #tpu.memory_space<vmem>>) attributes {dimension_semantics = [#tpu.dimension_semantics<parallel>, #tpu.dimension_semantics<parallel>], iteration_bounds = array<i64: 1, 1>, scalar_prefetch = 0 : i64, scratch_operands = 0 : i64, tpu.core_type = #tpu.core_type<tc>, window_params = [{transform_indices = @transform_0, window_bounds = array<i64: 16, 32>}, {transform_indices = @transform_1, window_bounds = array<i64: 16, 1>}, {transform_indices = @transform_2, window_bounds = array<i64: 256, 32>}, {transform_indices = @transform_3, window_bounds = array<i64: 1, 256>}, {transform_indices = @transform_4, window_bounds = array<i64: 16, 256>}]} {
    %c0 = arith.constant 0 : index
    %c0_0 = arith.constant 0 : index
    %0 = vector.load %arg2[%c0, %c0_0] : memref<16x32xf32, #tpu.memory_space<vmem>>, vector<16x32xf32>
    %c0_1 = arith.constant 0 : index
    %c0_2 = arith.constant 0 : index
    %1 = vector.load %arg4[%c0_1, %c0_2] : memref<256x32xf32, #tpu.memory_space<vmem>>, vector<256x32xf32>
    %cst = arith.constant dense<0.000000e+00> : vector<16x256xf32>
    %2 = tpu.matmul %0, %1, %cst {dimension_numbers = #tpu.dot_dimension_numbers<[1], [1], [0], [0], [0, 0, 1, 0], [], []>} : vector<16x32xf32>, vector<256x32xf32>, vector<16x256xf32> -> vector<16x256xf32>
    %c0_3 = arith.constant 0 : index
    %c0_4 = arith.constant 0 : index
    %3 = vector.load %arg3[%c0_3, %c0_4] : memref<16x1xf32, #tpu.memory_space<vmem>>, vector<16x1xf32>
    %4 = vector.broadcast %3 : vector<16x1xf32> to vector<16x256xf32>
    %5 = arith.mulf %2, %4 : vector<16x256xf32>
    %c0_5 = arith.constant 0 : index
    %c0_6 = arith.constant 0 : index
    %6 = vector.load %arg5[%c0_5, %c0_6] : memref<1x256xf32, #tpu.memory_space<vmem>>, vector<1x256xf32>
    %7 = vector.broadcast %6 : vector<1x256xf32> to vector<16x256xf32>
    %8 = arith.mulf %5, %7 : vector<16x256xf32>
    %c0_7 = arith.constant 0 : index
    %c0_8 = arith.constant 0 : index
    %9 = vector.load %arg6[%c0_7, %c0_8] : memref<16x256xf32, #tpu.memory_space<vmem>>, vector<16x256xf32>
    tpu.vector_store %arg6[%c0_7, %c0_8], %8 {strides = array<i32>} : memref<16x256xf32, #tpu.memory_space<vmem>>, vector<16x256xf32>,
    return
  }
  func.func @transform_0(%arg0: i32, %arg1: i32) -> (i32, i32) {
    %c0_i32 = arith.constant 0 : i32
    %c0_i32_0 = arith.constant 0 : i32
    return %arg1, %c0_i32 : i32, i32
  }
  func.func @transform_1(%arg0: i32, %arg1: i32) -> (i32, i32) {
    %c0_i32 = arith.constant 0 : i32
    %c0_i32_0 = arith.constant 0 : i32
    return %arg1, %c0_i32 : i32, i32
  }
  func.func @transform_2(%arg0: i32, %arg1: i32) -> (i32, i32) {
    %c0_i32 = arith.constant 0 : i32
    %c0_i32_0 = arith.constant 0 : i32
    return %arg0, %c0_i32 : i32, i32
  }
  func.func @transform_3(%arg0: i32, %arg1: i32) -> (i32, i32) {
    %c0_i32 = arith.constant 0 : i32
    %c0_i32_0 = arith.constant 0 : i32
    return %c0_i32, %arg0 : i32, i32
  }
  func.func @transform_4(%arg0: i32, %arg1: i32) -> (i32, i32) {
    %c0_i32 = arith.constant 0 : i32
    return %arg1, %arg0 : i32, i32
  }
}

</mosaic_0001>

<bundles_post_ra>
// kernel: sphere_linear.1
= control target key start
LH: loop header
LB: loop body
LE: loop exit
PB: predicated region body
PF: predicated region fallthrough
CT: control target
= control target key end

     0   :  { %vm52_vm0 = vcmask 261120   ;;  %v413_v5 = vmov 0   ;;  %s632_s0 = inlined_call_operand.vmem [shape: f32[16,32], index: 0, kind: input, shape index: {}]   ;;  %s633_s1 = inlined_call_operand.vmem [shape: f32[16,1], index: 1, kind: input, shape index: {}]   ;;  %s634_s2 = inlined_call_operand.vmem [shape: f32[256,32], index: 2, kind: input, shape index: {}]   ;;  %s635_s3 = inlined_call_operand.vmem [shape: f32[1,256], index: 3, kind: input, shape index: {}]   ;;  %s636_s4 = inlined_call_operand.hbm [shape: f32[16,256], index: 4, kind: output, shape index: {}]  }
   0x1   :  { %v51_v0 = vld [vmem:[%s634_s2 + $0xf8] sm:$0xff]  ;;  %v50_v2 = vld [vmem:[%s634_s2 + $0xf0] sm:$0xff]  ;;  %v49_v4 = vld [vmem:[%s634_s2 + $0xe8] sm:$0xff]  ;;  %390 = vset.pattern.permute.xlu0 %v413_v5 }
   0x2   :  { %v35_v1 = vld [vmem:[%s634_s2 + $0x78] sm:$0xff]  ;;  %318 = vmatprep.subr.msk.mxu0 %vm52_vm0, %v51_v0  ;;  %354 = vmatprep.subr.msk.mxu1 %vm52_vm0, %v51_v0  ;;  %v34_v3 = vld [vmem:[%s634_s2 + $0x70] sm:$0xff]  ;;  %v33_v6 = vld [vmem:[%s634_s2 + $0x68] sm:$0xff] }
   0x3   :  { %319 = vmatpush3.xpose.msk.msra.mxu0 %vm52_vm0, %v35_v1  ;;  %370 = vmatpush3.xpose.msk.msra.mxu1 %vm52_vm0, %v35_v1  ;;  %v48_v7 = vld [vmem:[%s634_s2 + $0xe0] sm:$0xff]  ;;  %v488_v10 = vld [vmem:[%s632_s0 + $0x8] sm:$0xff]  ;;  %v47_v12 = vld [vmem:[%s634_s2 + $0xd8] sm:$0xff] }
   0x4   :  { %320 = vmatprep.subr.msk.mxu0 %vm52_vm0, %v50_v2  ;;  %355 = vmatprep.subr.msk.mxu1 %vm52_vm0, %v50_v2  ;;  %v478_v8 = vld [vmem:[%s632_s0] sm:$0xff] }
   0x5   :  { %v32_v9 = vld [vmem:[%s634_s2 + $0x60] sm:$0xff]  ;;  %350 = vmatprep.mubr.msk.f32.mxu0 %vm52_vm0, %v478_v8  ;;  %352 = vmatprep.mubr.msk.f32.mxu1 %vm52_vm0, %v488_v10 }
   0x6   :  { %v232_v11 = vld [vmem:[%s633_s1] sm:$0xff] }
   0x7   :  { %321 = vmatpush3.xpose.msk.msra.mxu0 %vm52_vm0, %v34_v3  ;;  %371 = vmatpush3.xpose.msk.msra.mxu1 %vm52_vm0, %v34_v3 }
   0x8   :  { %322 = vmatprep.subr.msk.mxu0 %vm52_vm0, %v49_v4  ;;  %356 = vmatprep.subr.msk.mxu1 %vm52_vm0, %v49_v4 }
   0xb   :  { %323 = vmatpush3.xpose.msk.msra.mxu0 %vm52_vm0, %v33_v6  ;;  %372 = vmatpush3.xpose.msk.msra.mxu1 %vm52_vm0, %v33_v6 }
   0xc   :  { %324 = vmatprep.subr.msk.mxu0 %vm52_vm0, %v48_v7  ;;  %357 = vmatprep.subr.msk.mxu1 %vm52_vm0, %v48_v7 }
   0xd   :  { %9 = vsyncpa [#allocation3], 0  ;;  %236 = vperm.xlu0 %390, %v232_v11   ;;  %v233_v13 = vld [vmem:[%s633_s1 + $0x8] sm:$0xff]  ;;  %v31_v14 = vld [vmem:[%s634_s2 + $0x58] sm:$0xff]  ;;  %v250_v37 = vlaneseq }
   0xe   :  { %v46_v15 = vld [vmem:[%s634_s2 + $0xd0] sm:$0xff]  ;;  %v45_v17 = vld [vmem:[%s634_s2 + $0xc8] sm:$0xff]  ;;  %v44_v19 = vld [vmem:[%s634_s2 + $0xc0] sm:$0xff] }
   0xf   :  { %325 = vmatpush3.xpose.msk.msra.mxu0 %vm52_vm0, %v32_v9  ;;  %373 = vmatpush3.xpose.msk.msra.mxu1 %vm52_vm0, %v32_v9  ;;  %v30_v16 = vld [vmem:[%s634_s2 + $0x50] sm:$0xff]  ;;  %v29_v18 = vld [vmem:[%s634_s2 + $0x48] sm:$0xff]  ;;  %v28_v20 = vld [vmem:[%s634_s2 + $0x40] sm:$0xff]  ;;  %v251_v38 = vshrl.u32 %v250_v37, 7 }
  0x10   :  { %326 = vmatprep.subr.msk.mxu0 %vm52_vm0, %v47_v12  ;;  %358 = vmatprep.subr.msk.mxu1 %vm52_vm0, %v47_v12  ;;  %v43_v21 = vld [vmem:[%s634_s2 + $0xb8] sm:$0xff]  ;;  %v42_v23 = vld [vmem:[%s634_s2 + $0xb0] sm:$0xff]  ;;  %v41_v25 = vld [vmem:[%s634_s2 + $0xa8] sm:$0xff] }
  0x11   :  { %241 = vperm.xlu0 %390, %v233_v13   ;;  %v27_v22 = vld [vmem:[%s634_s2 + $0x38] sm:$0xff]  ;;  %v26_v24 = vld [vmem:[%s634_s2 + $0x30] sm:$0xff]  ;;  %v25_v26 = vld [vmem:[%s634_s2 + $0x28] sm:$0xff]  ;;  %v252_v40 = vsub.s32 0, %v251_v38  ;;  %v256_v42 = vsub.s32 1, %v251_v38 }
  0x12   :  { %v40_v27 = vld [vmem:[%s634_s2 + $0xa0] sm:$0xff]  ;;  %v39_v29 = vld [vmem:[%s634_s2 + $0x98] sm:$0xff]  ;;  %v38_v31 = vld [vmem:[%s634_s2 + $0x90] sm:$0xff] }
  0x13   :  { %327 = vmatpush3.xpose.msk.msra.mxu0 %vm52_vm0, %v31_v14  ;;  %374 = vmatpush3.xpose.msk.msra.mxu1 %vm52_vm0, %v31_v14  ;;  %v24_v28 = vld [vmem:[%s634_s2 + $0x20] sm:$0xff]  ;;  %v23_v30 = vld [vmem:[%s634_s2 + $0x18] sm:$0xff]  ;;  %v22_v32 = vld [vmem:[%s634_s2 + $0x10] sm:$0xff] }
  0x14   :  { %328 = vmatprep.subr.msk.mxu0 %vm52_vm0, %v46_v15  ;;  %359 = vmatprep.subr.msk.mxu1 %vm52_vm0, %v46_v15  ;;  %v37_v33 = vld [vmem:[%s634_s2 + $0x88] sm:$0xff]  ;;  %v36_v35 = vld [vmem:[%s634_s2 + $0x80] sm:$0xff] }
  0x15   :  { %v21_v34 = vld [vmem:[%s634_s2 + $0x8] sm:$0xff]  ;;  %v20_v36 = vld [vmem:[%s634_s2] sm:$0xff]  ;;  %s414_s2 = smov [#allocation2]  }
  0x16   :  { %v248_v41 = vld [vmem:[%s635_s3] sm:$0x3]  ;;  %s273_s7 = sshll.u32 %s414_s2, 4  ;;  %s274_s7 = int_to_ptr.vmem [resolvable:$true] %s273_s7 }
  0x17   :  { %329 = vmatpush3.xpose.msk.msra.mxu0 %vm52_vm0, %v30_v16  ;;  %375 = vmatpush3.xpose.msk.msra.mxu1 %vm52_vm0, %v30_v16  ;;  %v253_v44 = vrot.slane %v248_v41, %v252_v40  ;;  %v257_v49 = vrot.slane %v248_v41, %v256_v42  ;;  %s391_s3 = scalar_lea.vmem %s274_s7, 512  ;;  %p396_p1 = scmp.lt.s32.totalorder %s274_s7, %s274_s7 }
  0x18   :  { %330 = vmatprep.subr.msk.mxu0 %vm52_vm0, %v45_v17  ;;  %360 = vmatprep.subr.msk.mxu1 %vm52_vm0, %v45_v17  ;;  %p392_p0 = scmp.ne.s32.totalorder %s274_s7, %s391_s3  ;;  %p397_p2 = scmp.lt.s32.totalorder %s391_s3, %s391_s3 }
  0x1a   :  { %p398_p3 = por %p397_p2, %p396_p1 }
  0x1b   :  { %331 = vmatpush3.xpose.msk.msra.mxu0 %vm52_vm0, %v29_v18  ;;  %376 = vmatpush3.xpose.msk.msra.mxu1 %vm52_vm0, %v29_v18 }
  0x1c   :  { %332 = vmatprep.subr.msk.mxu0 %vm52_vm0, %v44_v19  ;;  %361 = vmatprep.subr.msk.mxu1 %vm52_vm0, %v44_v19  ;;  %p399_p4 = pnand %p398_p3, %p392_p0 }
  0x1f   :  { %333 = vmatpush3.xpose.msk.msra.mxu0 %vm52_vm0, %v28_v20  ;;  %377 = vmatpush3.xpose.msk.msra.mxu1 %vm52_vm0, %v28_v20 }
  0x20   :  { %334 = vmatprep.subr.msk.mxu0 %vm52_vm0, %v43_v21  ;;  %362 = vmatprep.subr.msk.mxu1 %vm52_vm0, %v43_v21 }
  0x23   :  { %335 = vmatpush3.xpose.msk.msra.mxu0 %vm52_vm0, %v27_v22  ;;  %378 = vmatpush3.xpose.msk.msra.mxu1 %vm52_vm0, %v27_v22 }
  0x24   :  { %336 = vmatprep.subr.msk.mxu0 %vm52_vm0, %v42_v23  ;;  %363 = vmatprep.subr.msk.mxu1 %vm52_vm0, %v42_v23 }
  0x27   :  { %337 = vmatpush3.xpose.msk.msra.mxu0 %vm52_vm0, %v26_v24  ;;  %379 = vmatpush3.xpose.msk.msra.mxu1 %vm52_vm0, %v26_v24 }
  0x28   :  { %338 = vmatprep.subr.msk.mxu0 %vm52_vm0, %v41_v25  ;;  %364 = vmatprep.subr.msk.mxu1 %vm52_vm0, %v41_v25 }
  0x2b   :  { %339 = vmatpush3.xpose.msk.msra.mxu0 %vm52_vm0, %v25_v26  ;;  %380 = vmatpush3.xpose.msk.msra.mxu1 %vm52_vm0, %v25_v26 }
  0x2c   :  { %340 = vmatprep.subr.msk.mxu0 %vm52_vm0, %v40_v27  ;;  %365 = vmatprep.subr.msk.mxu1 %vm52_vm0, %v40_v27 }
  0x2f   :  { %341 = vmatpush3.xpose.msk.msra.mxu0 %vm52_vm0, %v24_v28  ;;  %381 = vmatpush3.xpose.msk.msra.mxu1 %vm52_vm0, %v24_v28 }
  0x30   :  { %342 = vmatprep.subr.msk.mxu0 %vm52_vm0, %v39_v29  ;;  %366 = vmatprep.subr.msk.mxu1 %vm52_vm0, %v39_v29 }
  0x33   :  { %343 = vmatpush3.xpose.msk.msra.mxu0 %vm52_vm0, %v23_v30  ;;  %382 = vmatpush3.xpose.msk.msra.mxu1 %vm52_vm0, %v23_v30 }
  0x34   :  { %344 = vmatprep.subr.msk.mxu0 %vm52_vm0, %v38_v31  ;;  %367 = vmatprep.subr.msk.mxu1 %vm52_vm0, %v38_v31 }
  0x37   :  { %345 = vmatpush3.xpose.msk.msra.mxu0 %vm52_vm0, %v22_v32  ;;  %383 = vmatpush3.xpose.msk.msra.mxu1 %vm52_vm0, %v22_v32 }
  0x38   :  { %346 = vmatprep.subr.msk.mxu0 %vm52_vm0, %v37_v33  ;;  %368 = vmatprep.subr.msk.mxu1 %vm52_vm0, %v37_v33 }
  0x3b   :  { %347 = vmatpush3.xpose.msk.msra.mxu0 %vm52_vm0, %v21_v34  ;;  %384 = vmatpush3.xpose.msk.msra.mxu1 %vm52_vm0, %v21_v34 }
  0x3c   :  { %348 = vmatprep.subr.msk.mxu0 %vm52_vm0, %v36_v35  ;;  %369 = vmatprep.subr.msk.mxu1 %vm52_vm0, %v36_v35 }
  0x3f   :  { %349 = vmatpush3.xpose.msk.msra.mxu0 %vm52_vm0, %v20_v36  ;;  %385 = vmatpush3.xpose.msk.msra.mxu1 %vm52_vm0, %v20_v36 }
  0x42   :  { %351 = vmatmul.mubr.msk.f32.vlgmr.msra.gmra.mxu0 %vm52_vm0, %v478_v8  ;;  %353 = vmatmul.mubr.msk.f32.vlgmr.msra.gmra.mxu1 %vm52_vm0, %v488_v10 }
  0x88   :  { %v237_v39 = vpop.permute.xlu0 %236 }
  0x8c   :  { %v242_v43 = vpop.permute.xlu0 %241 }
 0x102   :  { %v221_v45 = vpop.f32.mrf.mxu0  ;;  %v227_v46 = vpop.f32.mrf.mxu1 }
 0x103   :  { %v244_v47 = vmul.f32 %v237_v39, %v221_v45  ;;  %v246_v48 = vmul.f32 %v242_v43, %v227_v46 }
 0x104   :  { %v223_v50 = vpop.f32.mrf.mxu0  ;;  %v229_v51 = vpop.f32.mrf.mxu1 }
 0x105   :  { %v260_v52 = vmul.f32 %v253_v44, %v244_v47  ;;  %v262_v53 = vmul.f32 %v253_v44, %v246_v48  ;;  %v245_v54 = vmul.f32 %v237_v39, %v223_v50  ;;  %v247_v55 = vmul.f32 %v242_v43, %v229_v51 }
 0x107   :  { %264 = vst [vmem:[#allocation2] sm:$0xff] %v260_v52  ;;  %266 = vst [vmem:[#allocation2 + $0x10] sm:$0xff] %v262_v53  ;;  %v261_v56 = vmul.f32 %v257_v49, %v245_v54  ;;  %v263_v57 = vmul.f32 %v257_v49, %v247_v55 }
 0x109   :  { %265 = vst [vmem:[#allocation2 + $0x8] sm:$0xff] %v261_v56  ;;  %267 = vst [vmem:[#allocation2 + $0x18] sm:$0xff] %v263_v57 }
 0x10a   :  { %402 = shalt.err (!%p399_p4)
}
 0x10b   :  { %s415_s8 = smov 256   ;;  %s416_s9 = smov 16  }
 0x10c   :  { %279 = dma.vmem_to_hbm [thread:$0]  %s274_s7, 512, %s636_s4, [#allocation3], %s415_s8, %s415_s8, %s416_s9  }
 0x10d   :  { %411 = dma.done.wait [#allocation3], 512  }
 0x10e   :  { %412 = vsyncadd [#allocation3], 4294966784 }
 0x10f   :  { %283 = vsyncpa [#allocation3], 1 }

</bundles_post_ra>
